<compile_context>
chip_gen: v6e
topology: v6e:2x2x1
jax: 0.10.0
libtpu: 0.0.40
codegen_flags: <defaults>
</compile_context>

<pallas_src>
import jax
import jax.numpy as jnp
from jax.experimental import pallas as pl
from jax.experimental.pallas import tpu as pltpu  # noqa: F401  (TPU backend)

LANE = 128  # vreg lane width (last dim)


def _round_up(n: int, m: int) -> int:
    return ((n + m - 1) // m) * m


def mlp_kernel(x_ref, w1_ref, b1_ref, w2_ref, b2_ref, o_ref):
    # Fused: Linear(input->hidden) -> ReLU -> Linear(hidden->output).
    # MXU feeds are bf16; bias-add / ReLU / accumulation are f32.
    x = x_ref[...].astype(jnp.bfloat16)
    h = jnp.dot(x, w1_ref[...], preferred_element_type=jnp.float32) + b1_ref[...]
    h = jnp.maximum(h, 0.0)
    y = jnp.dot(h.astype(jnp.bfloat16), w2_ref[...],
                preferred_element_type=jnp.float32) + b2_ref[...]
    o_ref[...] = y.astype(o_ref.dtype)


def prepare_params(w1, b1, w2, b2):
    """Pad + cast weights ONCE at init (hoisted out of the per-call hot path).

    w1: (in, hid) -> (in, Hp) bf16      b1: (1, hid) -> (1, Hp) f32
    w2: (hid, out) -> (Hp, out) bf16    b2: (1, out) unchanged   f32
    Only the hidden dim is padded to 128 (lane dim of h / sublane dim of w2);
    the in=32 and out=16 dims are left unpadded and handled by masked vld/vst.
    Zero padding is exact: padded b1 entries are 0, ReLU(0)=0, padded w2 rows
    are 0, so the padded hidden columns contribute exactly nothing.
    """
    in_size, hid = w1.shape
    Hp = _round_up(hid, LANE)
    w1p = jnp.pad(w1, ((0, 0), (0, Hp - hid))).astype(jnp.bfloat16)
    b1p = jnp.pad(b1, ((0, 0), (0, Hp - hid)))            # stays f32
    w2p = jnp.pad(w2, ((0, Hp - hid), (0, 0))).astype(jnp.bfloat16)
    b2p = b2                                              # stays f32, (1, out)
    return w1p, b1p, w2p, b2p


@jax.jit
def simple_model_forward(x, w1p, b1p, w2p, b2p):
    B = x.shape[0]
    out_size = w2p.shape[1]

    # grid=() -> block_shape equals full array dims for every operand, so the
    # (8,128) divisibility rule is waived; Mosaic emits masked accesses for
    # the sub-128 lane dims.  Working set ~20 KB: one VMEM block everywhere.
    full = lambda shape: pl.BlockSpec(shape, lambda: (0,) * len(shape))

    return pl.pallas_call(
        mlp_kernel,
        out_shape=jax.ShapeDtypeStruct((B, out_size), x.dtype),
        grid=(),
        in_specs=[
            full(x.shape),
            full(w1p.shape),
            full(b1p.shape),
            full(w2p.shape),
            full(b2p.shape),
        ],
        out_specs=full((B, out_size)),
    )(x, w1p, b1p, w2p, b2p)


def init_linear(key, fan_in, fan_out, dtype=jnp.float32):
    # Mirror torch.nn.Linear default init: U(-1/sqrt(fan_in), 1/sqrt(fan_in)).
    kw, kb = jax.random.split(key)
    bound = 1.0 / jnp.sqrt(jnp.asarray(fan_in, dtype))
    w = jax.random.uniform(kw, (fan_in, fan_out), dtype, -bound, bound)
    b = jax.random.uniform(kb, (1, fan_out), dtype, -bound, bound)
    return w, b


if __name__ == "__main__":
    batch, input_size, hidden_size, output_size = 8, 32, 64, 16

    key = jax.random.PRNGKey(0)
    kx, k1, k2 = jax.random.split(key, 3)

    x = jax.random.normal(kx, (batch, input_size), jnp.float32)
    w1, b1 = init_linear(k1, input_size, hidden_size)
    w2, b2 = init_linear(k2, hidden_size, output_size)

    # Pad/cast weights once, outside the per-call path.
    params = prepare_params(w1, b1, w2, b2)

    out = simple_model_forward(x, *params)
    jax.block_until_ready(out)
    assert out.shape == (batch, output_size)

    # Reference 1: same numeric path (bf16 MXU operands, f32 accum/bias/ReLU).
    h_ref = jnp.maximum(
        jnp.dot(x.astype(jnp.bfloat16), w1.astype(jnp.bfloat16),
                preferred_element_type=jnp.float32) + b1, 0.0)
    ref_bf16 = jnp.dot(h_ref.astype(jnp.bfloat16), w2.astype(jnp.bfloat16),
                       preferred_element_type=jnp.float32) + b2
    assert jnp.allclose(out, ref_bf16, atol=1e-3, rtol=1e-3), \
        "mismatch vs bf16-path reference"

    # Reference 2: plain f32 math, loose tolerance (bf16 MXU feed rounding).
    # TODO(synk): if bit-level f32 fidelity vs PyTorch is required, keep f32
    # operands and set precision=jax.lax.Precision.HIGHEST in the dots.
    ref_f32 = jnp.maximum(x @ w1 + b1, 0.0) @ w2 + b2
    assert jnp.allclose(out, ref_f32, atol=5e-2, rtol=5e-2), \
        "mismatch vs f32 reference"

    print("KERNEL_OK")
</pallas_src>

<mosaic_0001>
module attributes {stable_mosaic.version = 11 : i64} {
  func.func @mlp_kernel(%arg0: memref<8x32xf32, #tpu.memory_space<vmem>>, %arg1: memref<32x128xbf16, #tpu.memory_space<vmem>>, %arg2: memref<1x128xf32, #tpu.memory_space<vmem>>, %arg3: memref<128x16xbf16, #tpu.memory_space<vmem>>, %arg4: memref<1x16xf32, #tpu.memory_space<vmem>>, %arg5: memref<8x16xf32, #tpu.memory_space<vmem>>) attributes {dimension_semantics = [], scalar_prefetch = 0 : i64, scratch_operands = 0 : i64, tpu.core_type = #tpu.core_type<tc>} {
    %c0 = arith.constant 0 : index
    %c0_0 = arith.constant 0 : index
    %0 = vector.load %arg0[%c0, %c0_0] : memref<8x32xf32, #tpu.memory_space<vmem>>, vector<8x32xf32>
    %1 = arith.truncf %0 : vector<8x32xf32> to vector<8x32xbf16>
    %c0_1 = arith.constant 0 : index
    %c0_2 = arith.constant 0 : index
    %2 = vector.load %arg1[%c0_1, %c0_2] : memref<32x128xbf16, #tpu.memory_space<vmem>>, vector<32x128xbf16>
    %cst = arith.constant dense<0.000000e+00> : vector<8x128xf32>
    %3 = tpu.matmul %1, %2, %cst {dimension_numbers = #tpu.dot_dimension_numbers<[1], [0], [0], [1], [0, 0, 1, 1], [], []>} : vector<8x32xbf16>, vector<32x128xbf16>, vector<8x128xf32> -> vector<8x128xf32>
    %c0_3 = arith.constant 0 : index
    %c0_4 = arith.constant 0 : index
    %4 = vector.load %arg2[%c0_3, %c0_4] : memref<1x128xf32, #tpu.memory_space<vmem>>, vector<1x128xf32>
    %5 = vector.broadcast %4 : vector<1x128xf32> to vector<8x128xf32>
    %6 = arith.addf %3, %5 : vector<8x128xf32>
    %cst_5 = arith.constant 0.000000e+00 : f32
    %7 = vector.broadcast %cst_5 : f32 to vector<8x128xf32>
    %8 = arith.maximumf %6, %7 : vector<8x128xf32>
    %9 = arith.truncf %8 : vector<8x128xf32> to vector<8x128xbf16>
    %c0_6 = arith.constant 0 : index
    %c0_7 = arith.constant 0 : index
    %10 = vector.load %arg3[%c0_6, %c0_7] : memref<128x16xbf16, #tpu.memory_space<vmem>>, vector<128x16xbf16>
    %cst_8 = arith.constant dense<0.000000e+00> : vector<8x16xf32>
    %11 = tpu.matmul %9, %10, %cst_8 {dimension_numbers = #tpu.dot_dimension_numbers<[1], [0], [0], [1], [0, 0, 1, 1], [], []>} : vector<8x128xbf16>, vector<128x16xbf16>, vector<8x16xf32> -> vector<8x16xf32>
    %c0_9 = arith.constant 0 : index
    %c0_10 = arith.constant 0 : index
    %12 = vector.load %arg4[%c0_9, %c0_10] : memref<1x16xf32, #tpu.memory_space<vmem>>, vector<1x16xf32>
    %13 = vector.broadcast %12 : vector<1x16xf32> to vector<8x16xf32>
    %14 = arith.addf %11, %13 : vector<8x16xf32>
    %c0_11 = arith.constant 0 : index
    %c0_12 = arith.constant 0 : index
    %15 = vector.load %arg5[%c0_11, %c0_12] : memref<8x16xf32, #tpu.memory_space<vmem>>, vector<8x16xf32>
    tpu.vector_store %arg5[%c0_11, %c0_12], %14 {strides = array<i32>} : memref<8x16xf32, #tpu.memory_space<vmem>>, vector<8x16xf32>,
    return
  }
}

</mosaic_0001>

<bundles_post_ra>
// kernel: simple_model_forward.1
= control target key start
LH: loop header
LB: loop body
LE: loop exit
PB: predicated region body
PF: predicated region fallthrough
CT: control target
= control target key end

     0   :  { %v308_v1 = vmov 0.0   ;;  %vm309_vm0 = vmmov 0   ;;  %vm47_vm1 = vcmask 261120   ;;  %s383_s0 = inlined_call_operand.vmem [shape: f32[8,32], index: 0, kind: input, shape index: {}]   ;;  %s384_s1 = inlined_call_operand.vmem [shape: bf16[32,128], index: 1, kind: input, shape index: {}]   ;;  %s385_s2 = inlined_call_operand.vmem [shape: f32[1,128], index: 2, kind: input, shape index: {}]   ;;  %s386_s3 = inlined_call_operand.vmem [shape: bf16[128,16], index: 3, kind: input, shape index: {}]   ;;  %s387_s4 = inlined_call_operand.vmem [shape: f32[1,16], index: 4, kind: input, shape index: {}]   ;;  %s388_s5 = inlined_call_operand.hbm [shape: f32[8,16], index: 5, kind: output, shape index: {}]  }
   0x1   :  { %v276_v0 = vld [vmem:[%s384_s1 + $0x8] sm:$0xff]   ;;  %245 = vmatprep.subr.bf16.mxu0 %v308_v1  ;;  %v277_v2 = vld [vmem:[%s384_s1] sm:$0xff]   ;;  %253 = vmatprep.subr.bf16.mxu1 %v308_v1  ;;  %v278_v4 = vld [vmem:[%s386_s3 + $0x38] sm:$0xff]  }
   0x2   :  { %246 = vmatpush3.bf16.msra.mxu0 %v276_v0  ;;  %249 = vmatprep.mubr.msk.bf16.mxu0 %vm309_vm0, %v308_v1  ;;  %v22_v3 = vld [vmem:[%s383_s0] sm:$0xff]  ;;  %v279_v6 = vld [vmem:[%s386_s3 + $0x30] sm:$0xff]   ;;  %v280_v7 = vld [vmem:[%s386_s3 + $0x28] sm:$0xff]  }
   0x3   :  { %247 = vmatprep.subr.bf16.mxu0 %v308_v1  ;;  %269 = vmatprep.mubr.msk.bf16.mxu1 %vm309_vm0, %v308_v1  ;;  %v23_v5 = vpack.c.bf16 %v22_v3, %v22_v3 }
   0x4   :  { %254 = vmatpush3.bf16.msra.mxu1 %v278_v4 }
   0x5   :  { %255 = vmatprep.subr.bf16.mxu1 %v308_v1 }
   0x6   :  { %248 = vmatpush3.bf16.msra.mxu0 %v277_v2 }
   0x8   :  { %256 = vmatpush3.bf16.msra.mxu1 %v279_v6 }
   0x9   :  { %250 = vmatmul.mubr.msk.bf16.vlgmr.msra.gmra.mxu0 %vm47_vm1, %v23_v5  ;;  %257 = vmatprep.subr.bf16.mxu1 %v308_v1 }
   0xa   :  { %10 = vsyncpa [#allocation3], 0  ;;  %v281_v8 = vld [vmem:[%s386_s3 + $0x20] sm:$0xff]   ;;  %v282_v9 = vld [vmem:[%s386_s3 + $0x18] sm:$0xff]   ;;  %s310_s17 = smov [#allocation2]   ;;  %vm204_vm2 = vcmask 130048  }
   0xb   :  { %v283_v10 = vld [vmem:[%s386_s3 + $0x10] sm:$0xff]   ;;  %v284_v11 = vld [vmem:[%s386_s3 + $0x8] sm:$0xff]   ;;  %v285_v12 = vld [vmem:[%s386_s3] sm:$0xff]   ;;  %s212_s18 = sshll.u32 %s310_s17, 4  ;;  %s213_s18 = int_to_ptr.vmem [resolvable:$true] %s212_s18 }
   0xc   :  { %258 = vmatpush3.bf16.msra.mxu1 %v280_v7  ;;  %v220_v13 = vld [vmem:[%s385_s2] ss:$0 sm:$0xff]  ;;  %s286_s2 = scalar_lea.vmem %s213_s18, 128  ;;  %p291_p1 = scmp.lt.s32.totalorder %s213_s18, %s213_s18 }
   0xd   :  { %259 = vmatprep.subr.bf16.mxu1 %v308_v1  ;;  %v224_v21 = vld [vmem:[%s387_s4] ss:$0 sm:$0xff]  ;;  %p287_p0 = scmp.ne.s32.totalorder %s213_s18, %s286_s2  ;;  %p292_p2 = scmp.lt.s32.totalorder %s286_s2, %s286_s2 }
   0xf   :  { %p293_p3 = por %p292_p2, %p291_p1 }
  0x10   :  { %260 = vmatpush3.bf16.msra.mxu1 %v281_v8 }
  0x11   :  { %261 = vmatprep.subr.bf16.mxu1 %v308_v1  ;;  %p294_p4 = pnand %p293_p3, %p287_p0 }
  0x14   :  { %262 = vmatpush3.bf16.msra.mxu1 %v282_v9 }
  0x15   :  { %263 = vmatprep.subr.bf16.mxu1 %v308_v1 }
  0x18   :  { %264 = vmatpush3.bf16.msra.mxu1 %v283_v10 }
  0x19   :  { %265 = vmatprep.subr.bf16.mxu1 %v308_v1 }
  0x1c   :  { %266 = vmatpush3.bf16.msra.mxu1 %v284_v11 }
  0x1d   :  { %267 = vmatprep.subr.bf16.mxu1 %v308_v1 }
  0x20   :  { %268 = vmatpush3.bf16.msra.mxu1 %v285_v12 }
  0xc9   :  { %v85_v14 = vpop.f32.mrf.mxu0 }
  0xca   :  { %v86_v15 = vadd.f32 %v220_v13, %v85_v14 }
  0xcb   :  { %v251_v16 = vpop.f32.mrf.mxu0 }
  0xcc   :  { %v91_v17 = vmax.f32 %v86_v15, 0.0 }
  0xcd   :  { %v88_v18 = vpop.f32.mrf.mxu0 }
  0xce   :  { %v92_v19 = vpack.c.bf16 %v91_v17, %v91_v17 }
  0xcf   :  { %v252_v20 = vpop.f32.mrf.mxu0 }
  0xd0   :  { %270 = vmatmul.mubr.bf16.vlgmr.msra.gmra.mxu1 %v92_v19 }
 0x190   :  { %v198_v22 = vpop.f32.mrf.mxu1 }
 0x191   :  { %v199_v23 = vadd.f32 %v224_v21, %v198_v22 }
 0x192   :  { %v271_v24 = vpop.f32.mrf.mxu1 }
 0x193   :  { %205 = vst.msk [vmem:[#allocation2] sm:$0xff] %vm204_vm2, %v199_v23 }
 0x194   :  { %v201_v25 = vpop.f32.mrf.mxu1 }
 0x195   :  { %297 = shalt.err (!%p294_p4)
}
 0x196   :  { %215 = dma.vmem_to_hbm [thread:$0]  %s213_s18, 128, %s388_s5, [#allocation3]   ;;  %v272_v26 = vpop.f32.mrf.mxu1 }
 0x197   :  { %306 = dma.done.wait [#allocation3], 128  }
 0x198   :  { %307 = vsyncadd [#allocation3], 4294967168 }
 0x199   :  { %219 = vsyncpa [#allocation3], 1 }

</bundles_post_ra>
